<compile_context>
chip_gen: v6e
topology: v6e:2x2x1
jax: 0.10.0
libtpu: 0.0.40
codegen_flags: <defaults>
</compile_context>

<pallas_src>
import jax
import jax.numpy as jnp
from jax.experimental import pallas as pl
from jax.experimental.pallas import tpu as pltpu

_LANE = 128
_MAX_THW = 2048                 # lanes per tile (multiple of 128)
_TILE_BYTES_TARGET = 1 << 20    # ~1 MiB per x tile


def _round_up(x, m):
    return ((x + m - 1) // m) * m


def _pick_thw(hw_padded):
    """Lane-tile width: full HW if small, else the largest 128-multiple
    (<= 2048) that divides the padded HW (128 always does)."""
    if hw_padded <= _MAX_THW:
        return hw_padded
    for cand in (2048, 1024, 512, 256, 128):
        if hw_padded % cand == 0:
            return cand
    return _LANE  # unreachable: hw_padded is a multiple of 128


def _pick_tc(C, thw, itemsize):
    """Channel-tile height: full C if small, else a sublane-packed multiple
    sized so the x tile is ~1 MiB."""
    mult = {4: 8, 2: 16, 1: 32}.get(itemsize, 8)
    if C <= mult:
        return C
    max_rows = max(mult, _TILE_BYTES_TARGET // (thw * itemsize))
    tc = (max_rows // mult) * mult
    if tc >= C:
        return C
    return max(tc, mult)


# ----------------------------- kernels ------------------------------------

def _fma_kernel(x_ref, g_ref, b_ref, o_ref):
    # x_ref: (1, TC, THW); g_ref/b_ref: (1, 1, THW) broadcast over channels.
    o_ref[...] = (x_ref[...] * g_ref[...] + b_ref[...]).astype(o_ref.dtype)


def _mul_kernel(x_ref, g_ref, o_ref):
    o_ref[...] = (x_ref[...] * g_ref[...]).astype(o_ref.dtype)


def _add_kernel(x_ref, b_ref, o_ref):
    o_ref[...] = (x_ref[...] + b_ref[...]).astype(o_ref.dtype)


# ------------------------------ wrapper ------------------------------------

def _run_tiled(kernel, x, stats):
    """Run a lane-dense, tiled elementwise kernel over NCHW `x` with per-
    position (N,1,H,W) statistics broadcast over the channel axis."""
    N, C, H, W = x.shape
    HW = H * W
    HWp = _round_up(HW, _LANE)
    itemsize = jnp.dtype(x.dtype).itemsize
    thw = _pick_thw(HWp)
    tc = _pick_tc(C, thw, itemsize)

    x3 = x.reshape(N, C, HW)
    stats3 = [
        jnp.broadcast_to(s, (N, 1, H, W)).reshape(N, 1, HW).astype(x.dtype)
        for s in stats
    ]
    if HWp != HW:
        pad = HWp - HW
        x3 = jnp.pad(x3, ((0, 0), (0, 0), (0, pad)))
        stats3 = [jnp.pad(s, ((0, 0), (0, 0), (0, pad))) for s in stats3]

    # Grid: (batch, hw tiles, channel tiles). C innermost & "arbitrary" so
    # gamma/beta blocks stay resident in VMEM across all channel tiles.
    grid = (N, HWp // thw, pl.cdiv(C, tc))

    x_spec = pl.BlockSpec((1, tc, thw), lambda n, h, c: (n, c, h))
    s_spec = pl.BlockSpec((1, 1, thw), lambda n, h, c: (n, 0, h))

    out = pl.pallas_call(
        kernel,
        out_shape=jax.ShapeDtypeStruct((N, C, HWp), x.dtype),
        grid_spec=pltpu.PrefetchScalarGridSpec(
            num_scalar_prefetch=0,
            grid=grid,
            in_specs=[x_spec] + [s_spec] * len(stats3),
            out_specs=x_spec,
        ),
        compiler_params=pltpu.CompilerParams(
            dimension_semantics=("parallel", "parallel", "arbitrary"),
            vmem_limit_bytes=32 * 1024 * 1024,
        ),
        # Mirror torch's in-place contract: output may reuse x's buffer.
        # (Realized for free when x is donated / an intermediate; otherwise
        # XLA inserts a defensive copy to preserve the caller's x.)
        input_output_aliases={0: 0},
    )(x3, *stats3)

    if HWp != HW:
        out = out[:, :, :HW]
    return out.reshape(N, C, H, W)


@jax.jit
def _ms_fma(x, gamma, beta):
    return _run_tiled(_fma_kernel, x, (gamma, beta))


@jax.jit
def _ms_mul(x, gamma):
    return _run_tiled(_mul_kernel, x, (gamma,))


@jax.jit
def _ms_add(x, beta):
    return _run_tiled(_add_kernel, x, (beta,))


def ms_forward(x, beta=None, gamma=None):
    """MS.forward: x * gamma + beta (NCHW, gamma/beta broadcast)."""
    if gamma is None and beta is None:
        return x                      # identity: no kernel, no HBM traffic
    if beta is None:
        return _ms_mul(x, gamma)      # scale only
    if gamma is None:
        return _ms_add(x, beta)       # shift only
    return _ms_fma(x, gamma, beta)    # fused scale + shift


class MS:
    """Mirror of the PyTorch MS module (stores optional default beta/gamma)."""

    def __init__(self, beta=None, gamma=None):
        self.gamma, self.beta = gamma, beta

    def __call__(self, x, beta=None, gamma=None):
        beta = self.beta if beta is None else beta
        gamma = self.gamma if gamma is None else gamma
        return ms_forward(x, beta=beta, gamma=gamma)
        # TODO(synk): torch mutates x in place; JAX arrays are immutable, so
        # callers must use the returned array (donate x to avoid the copy).


if __name__ == "__main__":
    key = jax.random.PRNGKey(0)
    kx, kg, kb, k2x, k2g, k2b = jax.random.split(key, 6)

    N, C, H, W = 2, 4, 16, 16
    x = jax.random.normal(kx, (N, C, H, W), dtype=jnp.float32)
    # PONO-style per-position stats: shape (N, 1, H, W)
    gamma = jax.random.normal(kg, (N, 1, H, W), dtype=jnp.float32) + 1.0
    beta = jax.random.normal(kb, (N, 1, H, W), dtype=jnp.float32)

    ms = MS()

    # Full scale + shift.
    out = jax.block_until_ready(ms(x, beta=beta, gamma=gamma))
    ref = x * gamma + beta
    assert out.shape == x.shape
    assert jnp.allclose(out, ref, atol=1e-6, rtol=1e-6)

    # Gamma-only / beta-only short-circuit paths.
    out_g = jax.block_until_ready(ms(x, gamma=gamma))
    assert jnp.allclose(out_g, x * gamma, atol=1e-6, rtol=1e-6)
    out_b = jax.block_until_ready(ms(x, beta=beta))
    assert jnp.allclose(out_b, x + beta, atol=1e-6, rtol=1e-6)

    # Identity path (both None): returns x directly, no kernel launched.
    out_id = jax.block_until_ready(ms(x))
    assert jnp.allclose(out_id, x, atol=1e-6, rtol=1e-6)

    # Non-128-aligned spatial size exercises the lane-padding path
    # (HW = 100 -> padded to 128) and a non-multiple-of-8 channel count.
    N2, C2, H2, W2 = 2, 12, 10, 10
    x2 = jax.random.normal(k2x, (N2, C2, H2, W2), dtype=jnp.float32)
    g2 = jax.random.normal(k2g, (N2, 1, H2, W2), dtype=jnp.float32) + 1.0
    b2 = jax.random.normal(k2b, (N2, 1, H2, W2), dtype=jnp.float32)
    out2 = jax.block_until_ready(ms(x2, beta=b2, gamma=g2))
    assert jnp.allclose(out2, x2 * g2 + b2, atol=1e-6, rtol=1e-6)

    print("KERNEL_OK")
</pallas_src>

<mosaic_0001>
module attributes {stable_mosaic.version = 11 : i64} {
  func.func @_fma_kernel(%arg0: i32, %arg1: i32, %arg2: i32, %arg3: memref<1x4x256xf32, #tpu.memory_space<vmem>>, %arg4: memref<1x1x256xf32, #tpu.memory_space<vmem>>, %arg5: memref<1x1x256xf32, #tpu.memory_space<vmem>>, %arg6: memref<1x4x256xf32, #tpu.memory_space<vmem>>) attributes {dimension_semantics = [#tpu.dimension_semantics<parallel>, #tpu.dimension_semantics<parallel>, #tpu.dimension_semantics<arbitrary>], iteration_bounds = array<i64: 2, 1, 1>, scalar_prefetch = 0 : i64, scratch_operands = 0 : i64, tpu.core_type = #tpu.core_type<tc>, window_params = [{transform_indices = @transform_0, window_bounds = array<i64: 1, 4, 256>}, {transform_indices = @transform_1, window_bounds = array<i64: 1, 1, 256>}, {transform_indices = @transform_2, window_bounds = array<i64: 1, 1, 256>}, {transform_indices = @transform_3, window_bounds = array<i64: 1, 4, 256>}]} {
    %c0 = arith.constant 0 : index
    %c0_0 = arith.constant 0 : index
    %c0_1 = arith.constant 0 : index
    %0 = vector.load %arg3[%c0, %c0_0, %c0_1] : memref<1x4x256xf32, #tpu.memory_space<vmem>>, vector<1x4x256xf32>
    %c0_2 = arith.constant 0 : index
    %c0_3 = arith.constant 0 : index
    %c0_4 = arith.constant 0 : index
    %1 = vector.load %arg4[%c0_2, %c0_3, %c0_4] : memref<1x1x256xf32, #tpu.memory_space<vmem>>, vector<1x1x256xf32>
    %2 = vector.broadcast %1 : vector<1x1x256xf32> to vector<1x4x256xf32>
    %3 = arith.mulf %0, %2 : vector<1x4x256xf32>
    %c0_5 = arith.constant 0 : index
    %c0_6 = arith.constant 0 : index
    %c0_7 = arith.constant 0 : index
    %4 = vector.load %arg5[%c0_5, %c0_6, %c0_7] : memref<1x1x256xf32, #tpu.memory_space<vmem>>, vector<1x1x256xf32>
    %5 = vector.broadcast %4 : vector<1x1x256xf32> to vector<1x4x256xf32>
    %6 = arith.addf %3, %5 : vector<1x4x256xf32>
    %c0_8 = arith.constant 0 : index
    %c0_9 = arith.constant 0 : index
    %c0_10 = arith.constant 0 : index
    %7 = vector.load %arg6[%c0_8, %c0_9, %c0_10] : memref<1x4x256xf32, #tpu.memory_space<vmem>>, vector<1x4x256xf32>
    tpu.vector_store %arg6[%c0_8, %c0_9, %c0_10], %6 {strides = array<i32>} : memref<1x4x256xf32, #tpu.memory_space<vmem>>, vector<1x4x256xf32>,
    return
  }
  func.func @transform_0(%arg0: i32, %arg1: i32, %arg2: i32) -> (i32, i32, i32) {
    %c0_i32 = arith.constant 0 : i32
    return %arg0, %arg2, %arg1 : i32, i32, i32
  }
  func.func @transform_1(%arg0: i32, %arg1: i32, %arg2: i32) -> (i32, i32, i32) {
    %c0_i32 = arith.constant 0 : i32
    %c0_i32_0 = arith.constant 0 : i32
    return %arg0, %c0_i32, %arg1 : i32, i32, i32
  }
  func.func @transform_2(%arg0: i32, %arg1: i32, %arg2: i32) -> (i32, i32, i32) {
    %c0_i32 = arith.constant 0 : i32
    %c0_i32_0 = arith.constant 0 : i32
    return %arg0, %c0_i32, %arg1 : i32, i32, i32
  }
  func.func @transform_3(%arg0: i32, %arg1: i32, %arg2: i32) -> (i32, i32, i32) {
    %c0_i32 = arith.constant 0 : i32
    return %arg0, %arg2, %arg1 : i32, i32, i32
  }
}

</mosaic_0001>

<bundles_post_ra>
// kernel: _ms_fma.1
= control target key start
LH: loop header
LB: loop body
LE: loop exit
PB: predicated region body
PF: predicated region fallthrough
CT: control target
= control target key end

     0   :  { %s560_s12 = smov 0   ;;  %s562_s13 = smov 0   ;;  %s599_s0 = inlined_call_operand.vmem [shape: f32[2,4,256], index: 0, kind: input, shape index: {}, may-alias: {0,3}]   ;;  %s600_s1 = inlined_call_operand.vmem [shape: f32[2,1,256], index: 1, kind: input, shape index: {}]   ;;  %s601_s2 = inlined_call_operand.vmem [shape: f32[2,1,256], index: 2, kind: input, shape index: {}]   ;;  %s602_s3 = inlined_call_operand.vmem [shape: f32[2,4,256], index: 3, kind: output, shape index: {}, may-alias: {0,3}]  }
   0x1   :  { %s564_s14 = smov 0  }
   0x2 LB: > { %s32_s15 = sadd.s32 1, %s534_s13  ;;  %p481_p0 = scmp.ge.s32.totalorder %s538_s14, 1  ;;  %s538_s14 = sphi %s564_s14, %s13_s14   ;;  %s534_s13 = sphi %s562_s13, %s604_s13   ;;  %s530_s12 = sphi %s560_s12, %s603_s12  }
   0x3   : > { %p34_p1 = scmp.ge.s32.totalorder %s32_s15, 2  ;;  %p205_p2 = scmp.lt.s32.totalorder %s538_s14, 3 }
   0x5   : > { %s606_s15 = smov (%p34_p1, %s32_s15), 0  ;;  %p206_p3 = pnand %p481_p0, %p205_p2 }
   0x6   : > { %p262_p4 = scmp.lt.s32.totalorder (!%p206_p3), %s530_s12, 1 }
   0x7   : > { %209 = sbr.rel (%p206_p3) target bundleno = 27 (0x1b), region = 32 }
   0xc   : > { %v310_v0 = vlaneseq  ;;  %s608_s12 = smov (!%p262_p4, %s530_s12), 1 }
   0xd   : > { %s490_s16 = sshll.u32 %s608_s12, 3  ;;  %s484_s17 = sshll.u32 %s608_s12, 1 }
   0xe   : > { %v311_v1 = vshrl.u32 %v310_v0, 7  ;;  %s273_s20 = scalar_lea.vmem %s599_s0, %s490_s16  ;;  %s282_s23 = scalar_lea.vmem %s600_s1, %s484_s17 }
   0xf   : > { %s291_s26 = scalar_lea.vmem %s601_s2, %s484_s17  ;;  %v308_v4 = vld [vmem:[%s282_s23] sm:$0x3]  ;;  %s305_s29 = scalar_lea.vmem %s602_s3, %s490_s16 }
  0x10   : > { %v312_v2 = vsub.s32 0, %v311_v1  ;;  %v316_v3 = vsub.s32 1, %v311_v1  ;;  %v321_v7 = vld [vmem:[%s291_s26] sm:$0x3] }
  0x11   : > { %v307_v8 = vld [vmem:[%s273_s20] sm:$0xff] }
  0x12   : > { %v313_v5 = vrot.slane %v308_v4, %v312_v2  ;;  %v317_v6 = vrot.slane %v308_v4, %v316_v3  ;;  %v326_v9 = vrot.slane %v321_v7, %v312_v2  ;;  %v330_v10 = vrot.slane %v321_v7, %v316_v3 }
  0x14   : > { %v318_v11 = vcombine.low %v313_v5, %v317_v6  ;;  %v331_v12 = vcombine.low %v326_v9, %v330_v10 }
  0x16   : > { %v320_v13 = vmul.f32 %v318_v11, %v307_v8 }
  0x18   : > { %v333_v14 = vadd.f32 %v331_v12, %v320_v13 }
  0x1a   : > { %334 = vst [vmem:[%s305_s29] sm:$0xff] %v333_v14 }
  0x1b PF: > { %s13_s14 = sadd.s32 1, %s538_s14   ;;  %s603_s12 = smov %s534_s13 }
  0x1c   : > { %p10_p5 = scmp.ge.s32.totalorder %s13_s14, 4   ;;  %s604_s13 = smov %s606_s15 }
  0x1e   :  { %12 = sbr.rel (!%p10_p5) target bundleno = 2 (0x2), region = 68 }

</bundles_post_ra>
